<compile_context>
chip_gen: v7x
topology: tpu7x:2x2x1
jax: 0.10.0
libtpu: 0.0.40
codegen_flags: <defaults>
</compile_context>

<pallas_src>
import functools

import jax
import jax.numpy as jnp
from jax.experimental import pallas as pl
from jax.experimental.pallas import tpu as pltpu


_VMEM_LIMIT_BYTES = 32 * 1024 * 1024        # explicit scoped-VMEM limit
_TILE_VMEM_BUDGET = 20 * 1024 * 1024        # budget used to derive the batch tile
_MAX_TILE_N = 2048


def _round_up(x, m):
    return ((x + m - 1) // m) * m


def _cb_ce_kernel(pred_ref, pred_gt_ref, w_gt_ref, out_ref, *, gamma, exp_in_bf16):
    pred = pred_ref[...].astype(jnp.float32)               # (TN, Cp) f32

    # row-wise logsumexp pieces -- the only full-width (TN, Cp) work
    m = jnp.max(pred, axis=1, keepdims=True)               # (TN, 1)
    z = pred - m                                           # (TN, Cp)
    if exp_in_bf16:
        ez = jnp.exp(z.astype(jnp.bfloat16)).astype(jnp.float32)
    else:
        ez = jnp.exp(z)
    s = jnp.sum(ez, axis=1, keepdims=True)                 # (TN, 1)
    log_s = jnp.log(s)                                     # (TN, 1)

    # per-row math only from here on (gathers were hoisted to the wrapper)
    z_gt = pred_gt_ref[...] - m                            # (TN, 1)
    log_p_gt = z_gt - log_s                                # log_softmax at gt

    if gamma == 0:
        focal = jnp.ones_like(log_p_gt)
    else:
        p_gt = jnp.exp(log_p_gt)
        one_minus = jnp.maximum(1.0 - p_gt, 0.0)           # clamp: no pow(neg, frac)
        if float(gamma).is_integer() and 1 <= int(gamma) <= 4:
            focal = one_minus
            for _ in range(int(gamma) - 1):
                focal = focal * one_minus                  # VPU multiplies, no EUP pow
        else:
            focal = one_minus ** gamma

    # padded batch rows have w_gt == 0, so they contribute exactly 0
    out_ref[...] = -focal * log_p_gt * w_gt_ref[...]       # (TN, 1) per-row terms


def cb_cross_entropy(pred, gt, ny, beta=0.0, gamma=0.0, exp_in_bf16=False):
    """JAX/Pallas equivalent of CBCrossEntropy(ny, device, beta, gamma)(pred, gt)."""
    pred = jnp.asarray(pred)
    n, c = pred.shape
    gt = jnp.asarray(gt).astype(jnp.int32)

    # W = (1 - beta) / (1 - beta ** ny), shape (C,)  (plain-JAX parameter setup)
    ny_arr = jnp.asarray(ny, dtype=jnp.float32).reshape(-1)
    w = ((1.0 - beta) / (1.0 - jnp.power(jnp.float32(beta), ny_arr))).astype(jnp.float32)

    # hoisted gathers (read only N elements -- negligible vs streaming N*C)
    pred_gt = jnp.take_along_axis(pred, gt[:, None], axis=1).astype(jnp.float32)  # (N, 1)
    w_gt = w[gt][:, None]                                                          # (N, 1)

    # pad the class axis to a multiple of 128 lanes (pred -> -1e30 so exp -> 0)
    c_pad = _round_up(max(c, 128), 128)
    if c_pad > c:
        pred = jnp.pad(pred, ((0, 0), (0, c_pad - c)), constant_values=-1e30)

    # VMEM-budgeted batch tile: double-buffered pred DMA + ~3 live f32 temps
    in_bytes = jnp.dtype(pred.dtype).itemsize
    sub = 8 if in_bytes >= 4 else (16 if in_bytes == 2 else 32)
    per_row_bytes = c_pad * (2 * in_bytes + 3 * 4)
    tn = max(sub, (int(_TILE_VMEM_BUDGET // per_row_bytes) // sub) * sub)
    tn = min(tn, _MAX_TILE_N)
    tn = min(tn, _round_up(n, sub))

    # pad the batch to a whole number of tiles; padded rows get w_gt = 0
    n_pad = _round_up(n, tn)
    if n_pad > n:
        pred = jnp.pad(pred, ((0, n_pad - n), (0, 0)))
        pred_gt = jnp.pad(pred_gt, ((0, n_pad - n), (0, 0)))
        w_gt = jnp.pad(w_gt, ((0, n_pad - n), (0, 0)))
    grid = (n_pad // tn,)

    kernel = functools.partial(_cb_ce_kernel, gamma=gamma, exp_in_bf16=exp_in_bf16)

    terms = pl.pallas_call(
        kernel,
        out_shape=jax.ShapeDtypeStruct((n_pad, 1), jnp.float32),
        grid_spec=pltpu.PrefetchScalarGridSpec(
            num_scalar_prefetch=0,
            grid=grid,
            in_specs=[
                pl.BlockSpec((tn, c_pad), lambda i: (i, 0)),   # pred tile
                pl.BlockSpec((tn, 1), lambda i: (i, 0)),       # pred[gt] per row
                pl.BlockSpec((tn, 1), lambda i: (i, 0)),       # W[gt] per row
            ],
            out_specs=pl.BlockSpec((tn, 1), lambda i: (i, 0)), # per-row loss terms
        ),
        compiler_params=pltpu.CompilerParams(
            dimension_semantics=("parallel",),                 # v7x: sharded over 2 TCs
            vmem_limit_bytes=_VMEM_LIMIT_BYTES),
    )(pred, pred_gt, w_gt)

    # padded rows contribute 0 (w_gt == 0), so a plain sum is exact
    return jnp.sum(terms) / n


def _ref_loss(pred, gt, ny, beta, gamma):
    ny = jnp.asarray(ny, dtype=jnp.float32).reshape(1, -1)
    w = (1.0 - beta) / (1.0 - jnp.power(jnp.float32(beta), ny))
    sm = jax.nn.softmax(pred, axis=1)
    lsm = jax.nn.log_softmax(pred, axis=1)
    if gamma == 0:
        focal = jnp.ones_like(sm)
    else:
        focal = (1.0 - sm) ** gamma
    p = -focal * lsm * w
    picked = jnp.take_along_axis(p, gt[:, None].astype(jnp.int32), axis=1)[:, 0]
    return picked.mean()


if __name__ == "__main__":
    N, C = 10, 32           # batch, num classes (exercises both class & batch padding)
    beta, gamma = 0.99, 2.0

    key = jax.random.PRNGKey(0)
    k1, k2 = jax.random.split(key)
    pred = jax.random.normal(k1, (N, C), dtype=jnp.float32)
    gt = jax.random.randint(k2, (N,), 0, C, dtype=jnp.int32)
    # deterministic synthetic per-class sample counts (shape [C])
    ny = (jnp.arange(C, dtype=jnp.float32) + 1.0) * 10.0

    loss = cb_cross_entropy(pred, gt, ny, beta=beta, gamma=gamma)
    loss = jax.block_until_ready(loss)

    ref = _ref_loss(pred, gt, ny, beta, gamma)
    assert jnp.allclose(loss, ref, rtol=1e-4, atol=1e-5), (loss, ref)

    print("KERNEL_OK")
</pallas_src>

<mosaic_0001>
module attributes {stable_mosaic.version = 11 : i64} {
  func.func @_cb_ce_kernel(%arg0: i32, %arg1: memref<16x128xf32, #tpu.memory_space<vmem>>, %arg2: memref<16x1xf32, #tpu.memory_space<vmem>>, %arg3: memref<16x1xf32, #tpu.memory_space<vmem>>, %arg4: memref<16x1xf32, #tpu.memory_space<vmem>>) attributes {dimension_semantics = [#tpu.dimension_semantics<parallel>], iteration_bounds = array<i64: 1>, scalar_prefetch = 0 : i64, scratch_operands = 0 : i64, tpu.core_type = #tpu.core_type<tc>, window_params = [{transform_indices = @transform_0, window_bounds = array<i64: 16, 128>}, {transform_indices = @transform_1, window_bounds = array<i64: 16, 1>}, {transform_indices = @transform_2, window_bounds = array<i64: 16, 1>}, {transform_indices = @transform_3, window_bounds = array<i64: 16, 1>}]} {
    %c0 = arith.constant 0 : index
    %c0_0 = arith.constant 0 : index
    %0 = vector.load %arg1[%c0, %c0_0] : memref<16x128xf32, #tpu.memory_space<vmem>>, vector<16x128xf32>
    %cst = arith.constant dense<0xFF800000> : vector<16xf32>
    %1 = vector.multi_reduction <maximumf>, %0, %cst [1] : vector<16x128xf32> to vector<16xf32>
    %2 = vector.shape_cast %1 : vector<16xf32> to vector<16x1xf32>
    %3 = vector.broadcast %2 : vector<16x1xf32> to vector<16x128xf32>
    %4 = arith.subf %0, %3 : vector<16x128xf32>
    %5 = math.exp %4 : vector<16x128xf32>
    %cst_1 = arith.constant dense<0.000000e+00> : vector<16xf32>
    %6 = vector.multi_reduction <add>, %5, %cst_1 [1] : vector<16x128xf32> to vector<16xf32>
    %7 = vector.shape_cast %6 : vector<16xf32> to vector<16x1xf32>
    %8 = math.log %7 : vector<16x1xf32>
    %c0_2 = arith.constant 0 : index
    %c0_3 = arith.constant 0 : index
    %9 = vector.load %arg2[%c0_2, %c0_3] : memref<16x1xf32, #tpu.memory_space<vmem>>, vector<16x1xf32>
    %10 = arith.subf %9, %2 : vector<16x1xf32>
    %11 = arith.subf %10, %8 : vector<16x1xf32>
    %12 = math.exp %11 : vector<16x1xf32>
    %cst_4 = arith.constant 1.000000e+00 : f32
    %13 = vector.broadcast %cst_4 : f32 to vector<16x1xf32>
    %14 = arith.subf %13, %12 : vector<16x1xf32>
    %cst_5 = arith.constant 0.000000e+00 : f32
    %15 = vector.broadcast %cst_5 : f32 to vector<16x1xf32>
    %16 = arith.maximumf %14, %15 : vector<16x1xf32>
    %17 = arith.mulf %16, %16 : vector<16x1xf32>
    %cst_6 = arith.constant 0.000000e+00 : f32
    %18 = vector.broadcast %cst_6 : f32 to vector<16x1xf32>
    %19 = arith.subf %18, %17 : vector<16x1xf32>
    %20 = arith.mulf %19, %11 : vector<16x1xf32>
    %c0_7 = arith.constant 0 : index
    %c0_8 = arith.constant 0 : index
    %21 = vector.load %arg3[%c0_7, %c0_8] : memref<16x1xf32, #tpu.memory_space<vmem>>, vector<16x1xf32>
    %22 = arith.mulf %20, %21 : vector<16x1xf32>
    %c0_9 = arith.constant 0 : index
    %c0_10 = arith.constant 0 : index
    %23 = vector.load %arg4[%c0_9, %c0_10] : memref<16x1xf32, #tpu.memory_space<vmem>>, vector<16x1xf32>
    tpu.vector_store %arg4[%c0_9, %c0_10], %22 {strides = array<i32>} : memref<16x1xf32, #tpu.memory_space<vmem>>, vector<16x1xf32>,
    return
  }
  func.func @transform_0(%arg0: i32) -> (i32, i32) {
    %c0_i32 = arith.constant 0 : i32
    %c0_i32_0 = arith.constant 0 : i32
    return %arg0, %c0_i32 : i32, i32
  }
  func.func @transform_1(%arg0: i32) -> (i32, i32) {
    %c0_i32 = arith.constant 0 : i32
    %c0_i32_0 = arith.constant 0 : i32
    return %arg0, %c0_i32 : i32, i32
  }
  func.func @transform_2(%arg0: i32) -> (i32, i32) {
    %c0_i32 = arith.constant 0 : i32
    %c0_i32_0 = arith.constant 0 : i32
    return %arg0, %c0_i32 : i32, i32
  }
  func.func @transform_3(%arg0: i32) -> (i32, i32) {
    %c0_i32 = arith.constant 0 : i32
    %c0_i32_0 = arith.constant 0 : i32
    return %arg0, %c0_i32 : i32, i32
  }
}

</mosaic_0001>

<bundles_post_ra>
// kernel: tpu_custom_call.1
= control target key start
LH: loop header
LB: loop body
LE: loop exit
PB: predicated region body
PF: predicated region fallthrough
CT: control target
= control target key end

     0   :  { %vm58_vm0 = vcmask 7168   ;;  %s121_s0 = inlined_call_operand.vmem [shape: f32[16,128], index: 0, kind: input, shape index: {}]   ;;  %s122_s1 = inlined_call_operand.vmem [shape: f32[16,1], index: 1, kind: input, shape index: {}]   ;;  %s123_s2 = inlined_call_operand.vmem [shape: f32[16,1], index: 2, kind: input, shape index: {}]   ;;  %s124_s3 = inlined_call_operand.vmem [shape: f32[16,1], index: 3, kind: output, shape index: {}]  }
   0x1   :  { %v14_v0 = vld [vmem:[%s121_s0] sm:$0xff]  ;;  %v15_v1 = vld [vmem:[%s121_s0 + $0x8] sm:$0xff] }
   0x2   :  { %16 = vmax.xlane.f32.xlu0 %v14_v0  ;;  %v34_v12 = vld [vmem:[%s122_s1] sm:$0xff]  ;;  %v35_v16 = vld [vmem:[%s122_s1 + $0x8] sm:$0xff] }
   0x3   :  { %v54_v32 = vld [vmem:[%s123_s2] sm:$0xff]  ;;  %v55_v37 = vld [vmem:[%s123_s2 + $0x8] sm:$0xff] }
   0x6   :  { %18 = vmax.xlane.f32.xlu0 %v15_v1 }
  0x8f   :  { %v17_v2 = vpop.xlane.xlu0 %16 }
  0x90   :  { %v20_v3 = vsub.f32 %v14_v0, %v17_v2  ;;  %v36_v14 = vsub.f32 %v34_v12, %v17_v2 }
  0x92   :  { %v22_v4 = vmul.f32 1.442695, %v20_v3 }
  0x93   :  { %v19_v5 = vpop.xlane.xlu0 %18 }
  0x94   :  { %v21_v6 = vsub.f32 %v15_v1, %v19_v5  ;;  %65 = vpow2.f32 %v22_v4  ;;  %v37_v19 = vsub.f32 %v35_v16, %v19_v5 }
  0x96   :  { %v24_v7 = vmul.f32 1.442695, %v21_v6 }
  0x98   :  { %67 = vpow2.f32 %v24_v7 }
  0x9e   :  { %v66_v8 = vpop.eup %65 }
  0x9f   :  { %26 = vadd.xlane.f32.xlu1 %v66_v8 }
  0xa2   :  { %v68_v9 = vpop.eup %67 }
  0xa3   :  { %28 = vadd.xlane.f32.xlu1 %v68_v9 }
 0x12c   :  { %v27_v10 = vpop.xlane.xlu1 %26 }
 0x12d   :  { %69 = vlog2.f32 %v27_v10 }
 0x130   :  { %v29_v11 = vpop.xlane.xlu1 %28 }
 0x131   :  { %71 = vlog2.f32 %v29_v11 }
 0x137   :  { %v70_v13 = vpop.eup %69 }
 0x138   :  { %v31_v15 = vmul.f32 0.6931472, %v70_v13 }
 0x13a   :  { %v38_v17 = vsub.f32 %v36_v14, %v31_v15 }
 0x13b   :  { %v72_v18 = vpop.eup %71 }
 0x13c   :  { %v40_v20 = vmul.f32 1.442695, %v38_v17  ;;  %v33_v21 = vmul.f32 0.6931472, %v72_v18 }
 0x13e   :  { %73 = vpow2.f32 %v40_v20  ;;  %v39_v22 = vsub.f32 %v37_v19, %v33_v21 }
 0x140   :  { %v42_v23 = vmul.f32 1.442695, %v39_v22 }
 0x142   :  { %75 = vpow2.f32 %v42_v23 }
 0x148   :  { %v74_v24 = vpop.eup %73 }
 0x149   :  { %v44_v25 = vsub.f32 1.0, %v74_v24 }
 0x14b   :  { %v46_v26 = vmax.f32 %v44_v25, 0.0 }
 0x14c   :  { %v76_v27 = vpop.eup %75 }
 0x14d   :  { %v48_v28 = vmul.f32 %v46_v26, %v46_v26  ;;  %v45_v29 = vsub.f32 1.0, %v76_v27 }
 0x14f   :  { %v50_v30 = vsub.f32 0.0, %v48_v28  ;;  %v47_v31 = vmax.f32 %v45_v29, 0.0 }
 0x151   :  { %v52_v33 = vmul.f32 %v50_v30, %v38_v17  ;;  %v49_v34 = vmul.f32 %v47_v31, %v47_v31 }
 0x153   :  { %v56_v35 = vmul.f32 %v54_v32, %v52_v33  ;;  %v51_v36 = vsub.f32 0.0, %v49_v34 }
 0x155   :  { %59 = vst.msk [vmem:[%s124_s3] sm:$0xff] %vm58_vm0, %v56_v35  ;;  %v53_v38 = vmul.f32 %v51_v36, %v39_v22 }
 0x157   :  { %v57_v39 = vmul.f32 %v55_v37, %v53_v38 }
 0x159   :  { %60 = vst.msk [vmem:[%s124_s3 + $0x8] sm:$0xff] %vm58_vm0, %v57_v39 }

</bundles_post_ra>
